<compile_context>
chip_gen: v5e
topology: v5e:2x2
jax: 0.10.0
libtpu: 0.0.40
codegen_flags: <defaults>
</compile_context>

<pallas_src>
import jax
import jax.numpy as jnp
from jax.experimental import pallas as pl
from jax.experimental.pallas import tpu as pltpu


def _discriminator_kernel(x_ref, w1_ref, b1_ref, w2_ref, b2_ref, out_ref):
    # Tiny parameters: loaded once per grid step, resident across steps.
    b1 = b1_ref[...]            # (1, P*H)
    b2 = b2_ref[...]            # (1, P)

    # Hidden layer on the MXU with f32 accumulation:
    #   (tile_p, P*D) @ (P*D, P*H) — block-diagonal W1 keeps packed row
    #   groups independent.
    h = jnp.dot(x_ref[...], w1_ref[...], preferred_element_type=jnp.float32)
    h = jnp.maximum(h + b1, 0.0)

    # Output layer: (tile_p, P*H) @ (P*H, P) block-diagonal matmul gives one
    # logit per packed row (P useful output columns instead of 1).
    y = jnp.dot(h, w2_ref[...], preferred_element_type=jnp.float32) + b2
    out_ref[...] = jnp.maximum(y, 0.0).astype(out_ref.dtype)


def discriminator_forward(x, w1, b1, w2, b2, *, tile_rows=20480):
    """x: (B, D) float32; returns (B, 1) float32.

    w1: (D, H), b1: (1, H), w2: (H, 1), b2: (1, 1)   (H = 12)
    tile_rows: batch tile size in ORIGINAL rows (rounded to the packing).
    """
    B, D = x.shape
    H = w1.shape[1]

    # Rows packed per MXU row so P*D <= 128 lanes (P = 5 for D = 24).
    P = max(1, 128 // D)
    pad_mult = 8 * P

    # Pad only to a multiple of P*8 (at most P*8-1 rows), never to tile size.
    b_pad = pl.cdiv(B, pad_mult) * pad_mult
    xp = x if b_pad == B else jnp.pad(x, ((0, b_pad - B), (0, 0)))
    bp = b_pad // P
    xr = xp.reshape(bp, P * D)          # contiguous row-major reshape: free

    # Block-diagonal parameters (tiny: a few KiB; exact zeros off-diagonal so
    # packed row groups cannot leak into each other).
    eye_p = jnp.eye(P, dtype=w1.dtype)
    w1_bd = jnp.einsum("pq,dj->pdqj", eye_p, w1).reshape(P * D, P * H)
    b1_bd = jnp.tile(b1.reshape(1, H), (1, P))
    w2_bd = jnp.einsum("qp,j->qjp", eye_p, w2.reshape(H)).reshape(P * H, P)
    b2_bd = jnp.tile(b2.reshape(1, 1), (1, P))

    # Packed-row batch tile.
    tile_p = max(8, (int(tile_rows) // P // 8) * 8)
    if tile_p >= bp:
        # Not enough rows for the requested tile: split into >= 2 grid steps
        # when there is enough work so both v7x TensorCores get a share.
        tile_p = bp if bp < 16 else max(8, ((pl.cdiv(bp, 2) + 7) // 8) * 8)
    num_tiles = pl.cdiv(bp, tile_p)

    flops = 2 * b_pad * (D * H + H)          # two affine layers (ReLU ~free)
    bytes_accessed = 4 * (b_pad * (D + 1) + P * D * P * H + P * H * P + 2 * P * H + P)
    cost = pl.CostEstimate(
        flops=flops, transcendentals=0, bytes_accessed=bytes_accessed
    )

    out = pl.pallas_call(
        _discriminator_kernel,
        out_shape=jax.ShapeDtypeStruct((bp, P), jnp.float32),
        grid=(num_tiles,),
        in_specs=[
            pl.BlockSpec((tile_p, P * D), lambda i: (i, 0)),   # packed x: batch-tiled
            pl.BlockSpec((P * D, P * H), lambda i: (0, 0)),    # W1_bd: resident
            pl.BlockSpec((1, P * H), lambda i: (0, 0)),        # b1_bd: resident
            pl.BlockSpec((P * H, P), lambda i: (0, 0)),        # W2_bd: resident
            pl.BlockSpec((1, P), lambda i: (0, 0)),            # b2_bd: resident
        ],
        out_specs=pl.BlockSpec((tile_p, P), lambda i: (i, 0)),
        compiler_params=pltpu.CompilerParams(
            dimension_semantics=("parallel",),
        ),
        cost_estimate=cost,
    )(xr, w1_bd, b1_bd, w2_bd, b2_bd)

    # (bp, P) -> (b_pad, 1) is a contiguous reshape; padded rows discarded.
    return out.reshape(b_pad, 1)[:B]


def init_params(key, input_dim, hidden_dim=12, out_dim=1):
    """PyTorch nn.Linear default init: U[-1/sqrt(fan_in), 1/sqrt(fan_in)].

    Weights stored as (in_features, out_features) so the kernel does x @ W + b.
    """
    k1, k2, k3, k4 = jax.random.split(key, 4)
    bound1 = 1.0 / jnp.sqrt(jnp.float32(input_dim))
    bound2 = 1.0 / jnp.sqrt(jnp.float32(hidden_dim))
    w1 = jax.random.uniform(k1, (input_dim, hidden_dim), jnp.float32, -bound1, bound1)
    b1 = jax.random.uniform(k2, (1, hidden_dim), jnp.float32, -bound1, bound1)
    w2 = jax.random.uniform(k3, (hidden_dim, out_dim), jnp.float32, -bound2, bound2)
    b2 = jax.random.uniform(k4, (1, out_dim), jnp.float32, -bound2, bound2)
    return w1, b1, w2, b2


def reference_forward(x, w1, b1, w2, b2):
    h = jnp.maximum(x @ w1 + b1, 0.0)
    return jnp.maximum(h @ w2 + b2, 0.0)


if __name__ == "__main__":
    key = jax.random.PRNGKey(0)
    k_x, k_p = jax.random.split(key)

    batch = 300        # not a multiple of P*8=40: exercises padding + slicing
    input_dim = 24     # credit_card_default.csv feature count (ID dropped)

    # MinMax-scaled data lives in [0, 1]; emulate with uniform inputs.
    x = jax.random.uniform(k_x, (batch, input_dim), jnp.float32)
    w1, b1, w2, b2 = init_params(k_p, input_dim)

    out = discriminator_forward(x, w1, b1, w2, b2)
    out = jax.block_until_ready(out)

    ref = reference_forward(x, w1, b1, w2, b2)
    assert out.shape == (batch, 1)
    assert jnp.allclose(out, ref, atol=1e-5, rtol=1e-5)

    print("KERNEL_OK")
</pallas_src>

<mosaic_0001>
module attributes {stable_mosaic.version = 11 : i64} {
  func.func @_discriminator_kernel(%arg0: i32, %arg1: memref<32x120xf32, #tpu.memory_space<vmem>>, %arg2: memref<120x60xf32, #tpu.memory_space<vmem>>, %arg3: memref<1x60xf32, #tpu.memory_space<vmem>>, %arg4: memref<60x5xf32, #tpu.memory_space<vmem>>, %arg5: memref<1x5xf32, #tpu.memory_space<vmem>>, %arg6: memref<32x5xf32, #tpu.memory_space<vmem>>) attributes {dimension_semantics = [#tpu.dimension_semantics<parallel>], iteration_bounds = array<i64: 2>, scalar_prefetch = 0 : i64, scratch_operands = 0 : i64, tpu.core_type = #tpu.core_type<tc>, window_params = [{transform_indices = @transform_0, window_bounds = array<i64: 32, 120>}, {pipeline_mode = #tpu.pipeline_mode<synchronous>, transform_indices = @transform_1, window_bounds = array<i64: 120, 60>}, {pipeline_mode = #tpu.pipeline_mode<synchronous>, transform_indices = @transform_2, window_bounds = array<i64: 1, 60>}, {pipeline_mode = #tpu.pipeline_mode<synchronous>, transform_indices = @transform_3, window_bounds = array<i64: 60, 5>}, {pipeline_mode = #tpu.pipeline_mode<synchronous>, transform_indices = @transform_4, window_bounds = array<i64: 1, 5>}, {transform_indices = @transform_5, window_bounds = array<i64: 32, 5>}]} {
    %c0 = arith.constant 0 : index
    %c0_0 = arith.constant 0 : index
    %0 = vector.load %arg3[%c0, %c0_0] : memref<1x60xf32, #tpu.memory_space<vmem>>, vector<1x60xf32>
    %c0_1 = arith.constant 0 : index
    %c0_2 = arith.constant 0 : index
    %1 = vector.load %arg5[%c0_1, %c0_2] : memref<1x5xf32, #tpu.memory_space<vmem>>, vector<1x5xf32>
    %c0_3 = arith.constant 0 : index
    %c0_4 = arith.constant 0 : index
    %2 = vector.load %arg1[%c0_3, %c0_4] : memref<32x120xf32, #tpu.memory_space<vmem>>, vector<32x120xf32>
    %c0_5 = arith.constant 0 : index
    %c0_6 = arith.constant 0 : index
    %3 = vector.load %arg2[%c0_5, %c0_6] : memref<120x60xf32, #tpu.memory_space<vmem>>, vector<120x60xf32>
    %cst = arith.constant dense<0.000000e+00> : vector<32x60xf32>
    %4 = tpu.matmul %2, %3, %cst {dimension_numbers = #tpu.dot_dimension_numbers<[1], [0], [0], [1], [0, 0, 1, 1], [], []>} : vector<32x120xf32>, vector<120x60xf32>, vector<32x60xf32> -> vector<32x60xf32>
    %5 = vector.broadcast %0 : vector<1x60xf32> to vector<32x60xf32>
    %6 = arith.addf %4, %5 : vector<32x60xf32>
    %cst_7 = arith.constant 0.000000e+00 : f32
    %7 = vector.broadcast %cst_7 : f32 to vector<32x60xf32>
    %8 = arith.maximumf %6, %7 : vector<32x60xf32>
    %c0_8 = arith.constant 0 : index
    %c0_9 = arith.constant 0 : index
    %9 = vector.load %arg4[%c0_8, %c0_9] : memref<60x5xf32, #tpu.memory_space<vmem>>, vector<60x5xf32>
    %cst_10 = arith.constant dense<0.000000e+00> : vector<32x5xf32>
    %10 = tpu.matmul %8, %9, %cst_10 {dimension_numbers = #tpu.dot_dimension_numbers<[1], [0], [0], [1], [0, 0, 1, 1], [], []>} : vector<32x60xf32>, vector<60x5xf32>, vector<32x5xf32> -> vector<32x5xf32>
    %11 = vector.broadcast %1 : vector<1x5xf32> to vector<32x5xf32>
    %12 = arith.addf %10, %11 : vector<32x5xf32>
    %cst_11 = arith.constant 0.000000e+00 : f32
    %13 = vector.broadcast %cst_11 : f32 to vector<32x5xf32>
    %14 = arith.maximumf %12, %13 : vector<32x5xf32>
    %c0_12 = arith.constant 0 : index
    %c0_13 = arith.constant 0 : index
    %15 = vector.load %arg6[%c0_12, %c0_13] : memref<32x5xf32, #tpu.memory_space<vmem>>, vector<32x5xf32>
    tpu.vector_store %arg6[%c0_12, %c0_13], %14 {strides = array<i32>} : memref<32x5xf32, #tpu.memory_space<vmem>>, vector<32x5xf32>,
    return
  }
  func.func @transform_0(%arg0: i32) -> (i32, i32) {
    %c0_i32 = arith.constant 0 : i32
    %c0_i32_0 = arith.constant 0 : i32
    return %arg0, %c0_i32 : i32, i32
  }
  func.func @transform_1(%arg0: i32) -> (i32, i32) {
    %c0_i32 = arith.constant 0 : i32
    %c0_i32_0 = arith.constant 0 : i32
    %c0_i32_1 = arith.constant 0 : i32
    return %c0_i32, %c0_i32_0 : i32, i32
  }
  func.func @transform_2(%arg0: i32) -> (i32, i32) {
    %c0_i32 = arith.constant 0 : i32
    %c0_i32_0 = arith.constant 0 : i32
    %c0_i32_1 = arith.constant 0 : i32
    return %c0_i32, %c0_i32_0 : i32, i32
  }
  func.func @transform_3(%arg0: i32) -> (i32, i32) {
    %c0_i32 = arith.constant 0 : i32
    %c0_i32_0 = arith.constant 0 : i32
    %c0_i32_1 = arith.constant 0 : i32
    return %c0_i32, %c0_i32_0 : i32, i32
  }
  func.func @transform_4(%arg0: i32) -> (i32, i32) {
    %c0_i32 = arith.constant 0 : i32
    %c0_i32_0 = arith.constant 0 : i32
    %c0_i32_1 = arith.constant 0 : i32
    return %c0_i32, %c0_i32_0 : i32, i32
  }
  func.func @transform_5(%arg0: i32) -> (i32, i32) {
    %c0_i32 = arith.constant 0 : i32
    %c0_i32_0 = arith.constant 0 : i32
    return %arg0, %c0_i32 : i32, i32
  }
}

</mosaic_0001>

<bundles_post_ra>
// kernel: tpu_custom_call.1
= control target key start
LH: loop header
LB: loop body
LE: loop exit
PB: predicated region body
PF: predicated region fallthrough
CT: control target
= control target key end

     0   :  { %s518_s18 = smov 0   ;;  %s617_s0 = inlined_call_operand.vmem [shape: f32[64,120], index: 0, kind: input, shape index: {}]   ;;  %s618_s1 = inlined_call_operand.vmem [shape: f32[120,60], index: 1, kind: input, shape index: {}]   ;;  %s619_s2 = inlined_call_operand.vmem [shape: f32[1,60], index: 2, kind: input, shape index: {}]   ;;  %s620_s3 = inlined_call_operand.vmem [shape: f32[60,5], index: 3, kind: input, shape index: {}]   ;;  %s621_s4 = inlined_call_operand.vmem [shape: f32[1,5], index: 4, kind: input, shape index: {}]   ;;  %s622_s5 = inlined_call_operand.vmem [shape: f32[64,5], index: 5, kind: output, shape index: {}]  }
   0x1 LB: > { %s420_s19 = sadd.s32 4294967295, %s486_s18   ;;  %p424_p0 = scmp.ge.s32.totalorder %s486_s18, 1  ;;  %s486_s18 = sphi %s518_s18, %s15_s18  }
   0x2   : > { %p188_p1 = scmp.lt.s32.totalorder %s486_s18, 3 }
   0x4   : > { %p189_p2 = pnand %p424_p0, %p188_p1 }
   0x5   : > { %s425_s13 = sshll.u32 (!%p189_p2), %s420_s19, 2 }
   0x6   : > { %192 = sbr.rel (%p189_p2) target bundleno = 326 (0x146), region = 40  ;;  %p217_p3 = scmp.lt.s32.totalorder (!%p189_p2), %s425_s13, 7 }
   0xb   : > { %v248_v0 = vld [vmem:[%s618_s1 + $0x70] sm:$0xff]  ;;  %v247_v1 = vld [vmem:[%s618_s1 + $0x68] sm:$0xff]  ;;  %v246_v2 = vld [vmem:[%s618_s1 + $0x60] sm:$0xff]  ;;  %vm322_vm0 = vcmask 1043456   ;;  %s624_s13 = smov (!%p217_p3, %s425_s13), 7  ;;  %vm252_vm1 = vcmask 982016  }
   0xc   : > { %266 = vmatpush.msra.mxu0 %v248_v0  ;;  %440 = vmatpush.msra.mxu2 %v248_v0  ;;  %v245_v3 = vld [vmem:[%s618_s1 + $0x58] sm:$0xff]  ;;  %v244_v4 = vld [vmem:[%s618_s1 + $0x50] sm:$0xff]  ;;  %v243_v5 = vld [vmem:[%s618_s1 + $0x48] sm:$0xff]  ;;  %s426_s6 = sshll.u32 %s624_s13, 3  ;;  %vm309_vm2 = vcmask 490496   ;;  %vm359_vm3 = vcmask 39936  }
   0xd   : > { %441 = vmatpush.msra.mxu3 %v248_v0  ;;  %v305_v6 = vld [vmem:[%s620_s3 + $0x38] sm:$0xf]  ;;  %v304_v7 = vld [vmem:[%s620_s3 + $0x30] sm:$0xff]  ;;  %v242_v8 = vld [vmem:[%s618_s1 + $0x40] sm:$0xff]  ;;  %s220_s14 = scalar_lea.vmem %s617_s0, %s426_s6  ;;  %s226_s30 = scalar_lea.vmem %s622_s5, %s426_s6 }
   0xe   : > { %267 = vmatpush.msra.mxu0 %v247_v1  ;;  %442 = vmatpush.msra.mxu2 %v247_v1  ;;  %v303_v9 = vld [vmem:[%s620_s3 + $0x28] sm:$0xff]  ;;  %v241_v10 = vld [vmem:[%s618_s1 + $0x38] sm:$0xff]  ;;  %v302_v11 = vld [vmem:[%s620_s3 + $0x20] sm:$0xff] }
   0xf   : > { %443 = vmatpush.msra.mxu3 %v247_v1  ;;  %433 = vmatpush.msk.msra.mxu1 %vm322_vm0, %v305_v6  ;;  %v240_v12 = vld [vmem:[%s618_s1 + $0x30] sm:$0xff]  ;;  %v301_v13 = vld [vmem:[%s620_s3 + $0x18] sm:$0xff]  ;;  %v239_v14 = vld [vmem:[%s618_s1 + $0x28] sm:$0xff] }
  0x10   : > { %268 = vmatpush.msra.mxu0 %v246_v2  ;;  %444 = vmatpush.msra.mxu2 %v246_v2  ;;  %v238_v15 = vld [vmem:[%s618_s1 + $0x20] sm:$0xff]  ;;  %v237_v16 = vld [vmem:[%s618_s1 + $0x18] sm:$0xff]  ;;  %v236_v17 = vld [vmem:[%s618_s1 + $0x10] sm:$0xff] }
  0x11   : > { %445 = vmatpush.msra.mxu3 %v246_v2  ;;  %335 = vmatpush.msra.mxu1 %v304_v7  ;;  %v235_v18 = vld [vmem:[%s618_s1 + $0x8] sm:$0xff]  ;;  %v234_v19 = vld [vmem:[%s618_s1] sm:$0xff]  ;;  %v232_v22 = vld [vmem:[%s220_s14 + $0x10] sm:$0xff] }
  0x12   : > { %269 = vmatpush.msra.mxu0 %v245_v3  ;;  %446 = vmatpush.msra.mxu2 %v245_v3  ;;  %v230_v20 = vld [vmem:[%s220_s14] sm:$0xff]  ;;  %v231_v21 = vld [vmem:[%s220_s14 + $0x8] sm:$0xff]  ;;  %v233_v23 = vld [vmem:[%s220_s14 + $0x18] sm:$0xff] }
  0x13   : > { %447 = vmatpush.msra.mxu3 %v245_v3  ;;  %336 = vmatpush.msra.mxu1 %v303_v9  ;;  %v300_v24 = vld [vmem:[%s620_s3 + $0x10] sm:$0xff]  ;;  %v299_v25 = vld [vmem:[%s620_s3 + $0x8] sm:$0xff]  ;;  %v298_v26 = vld [vmem:[%s620_s3] sm:$0xff] }
  0x14   : > { %270 = vmatpush.msra.mxu0 %v244_v4  ;;  %448 = vmatpush.msra.mxu2 %v244_v4  ;;  %v478_v27 = vld [vmem:[%s619_s2] ss:$0 sm:$0xff] }
  0x15   : > { %449 = vmatpush.msra.mxu3 %v244_v4  ;;  %337 = vmatpush.msra.mxu1 %v302_v11  ;;  %v479_v40 = vld [vmem:[%s621_s4] ss:$0 sm:$0xff] }
  0x16   : > { %271 = vmatpush.msra.mxu0 %v243_v5  ;;  %450 = vmatpush.msra.mxu2 %v243_v5 }
  0x17   : > { %451 = vmatpush.msra.mxu3 %v243_v5  ;;  %338 = vmatpush.msra.mxu1 %v301_v13 }
  0x18   : > { %272 = vmatpush.msra.mxu0 %v242_v8  ;;  %452 = vmatpush.msra.mxu2 %v242_v8 }
  0x19   : > { %453 = vmatpush.msra.mxu3 %v242_v8  ;;  %339 = vmatpush.msra.mxu1 %v300_v24 }
  0x1a   : > { %273 = vmatpush.msra.mxu0 %v241_v10  ;;  %454 = vmatpush.msra.mxu2 %v241_v10 }
  0x1b   : > { %455 = vmatpush.msra.mxu3 %v241_v10  ;;  %340 = vmatpush.msra.mxu1 %v299_v25 }
  0x1c   : > { %274 = vmatpush.msra.mxu0 %v240_v12  ;;  %456 = vmatpush.msra.mxu2 %v240_v12 }
  0x1d   : > { %457 = vmatpush.msra.mxu3 %v240_v12  ;;  %341 = vmatpush.msra.mxu1 %v298_v26 }
  0x1e   : > { %275 = vmatpush.msra.mxu0 %v239_v14  ;;  %458 = vmatpush.msra.mxu2 %v239_v14 }
  0x1f   : > { %459 = vmatpush.msra.mxu3 %v239_v14 }
  0x20   : > { %276 = vmatpush.msra.mxu0 %v238_v15  ;;  %460 = vmatpush.msra.mxu2 %v238_v15 }
  0x21   : > { %461 = vmatpush.msra.mxu3 %v238_v15 }
  0x22   : > { %277 = vmatpush.msra.mxu0 %v237_v16  ;;  %462 = vmatpush.msra.mxu2 %v237_v16 }
  0x23   : > { %463 = vmatpush.msra.mxu3 %v237_v16 }
  0x24   : > { %278 = vmatpush.msra.mxu0 %v236_v17  ;;  %464 = vmatpush.msra.mxu2 %v236_v17 }
  0x25   : > { %465 = vmatpush.msra.mxu3 %v236_v17 }
  0x26   : > { %279 = vmatpush.msra.mxu0 %v235_v18  ;;  %466 = vmatpush.msra.mxu2 %v235_v18 }
  0x27   : > { %467 = vmatpush.msra.mxu3 %v235_v18 }
  0x28   : > { %280 = vmatpush.msra.mxu0 %v234_v19  ;;  %468 = vmatpush.msra.mxu2 %v234_v19 }
  0x29   : > { %429 = vmatmul.msk.f32.vlgmr.msra.gmra.mxu0 %vm252_vm1, %v230_v20  ;;  %430 = vmatmul.msk.f32.vlgmr.msra.gmra.mxu2 %vm252_vm1, %v231_v21 }
  0x2a   : > { %469 = vmatpush.msra.mxu3 %v234_v19 }
  0x2b   : > { %431 = vmatmul.msk.f32.vlgmr.msra.gmra.mxu3 %vm252_vm1, %v232_v22 }
  0x33   : > { %432 = vmatmul.msk.f32.gmra.mxu3 %vm252_vm1, %v233_v23 }
  0xa6   : > { %v282_v28 = vpop.f32.mrf.mxu0 }
  0xa7   : > { %v283_v29 = vadd.f32 %v478_v27, %v282_v28 }
  0xa9   : > { %v294_v30 = vmax.f32 %v283_v29, 0.0 }
  0xab   : > { %434 = vmatmul.msk.f32.vlgmr.msra.gmra.mxu1 %vm309_vm2, %v294_v30 }
  0xac   : > { %v285_v31 = vpop.f32.mrf.mxu2 }
  0xad   : > { %v286_v32 = vadd.f32 %v478_v27, %v285_v31 }
  0xae   : > { %v288_v33 = vpop.f32.mrf.mxu3 }
  0xaf   : > { %v295_v34 = vmax.f32 %v286_v32, 0.0  ;;  %v289_v35 = vadd.f32 %v478_v27, %v288_v33 }
  0xb1   : > { %v296_v36 = vmax.f32 %v289_v35, 0.0 }
  0xb3   : > { %435 = vmatmul.msk.f32.gmra.mxu1 %vm309_vm2, %v295_v34 }
  0xb6   : > { %v291_v37 = vpop.f32.mrf.mxu3 }
  0xb7   : > { %v292_v38 = vadd.f32 %v478_v27, %v291_v37 }
  0xb9   : > { %v297_v39 = vmax.f32 %v292_v38, 0.0 }
  0xbb   : > { %436 = vmatmul.msk.f32.gmra.mxu1 %vm309_vm2, %v296_v36 }
  0xc3   : > { %437 = vmatmul.msk.f32.gmra.mxu1 %vm309_vm2, %v297_v39 }
 0x128   : > { %v343_v41 = vpop.f32.mrf.mxu1 }
 0x129   : > { %v344_v42 = vadd.f32 %v479_v40, %v343_v41 }
 0x12b   : > { %v355_v43 = vmax.f32 %v344_v42, 0.0 }
 0x12d   : > { %360 = vst.msk [vmem:[%s226_s30] sm:$0xff] %vm359_vm3, %v355_v43 }
 0x130   : > { %v346_v44 = vpop.f32.mrf.mxu1 }
 0x131   : > { %v347_v45 = vadd.f32 %v479_v40, %v346_v44 }
 0x133   : > { %v356_v46 = vmax.f32 %v347_v45, 0.0 }
 0x135   : > { %361 = vst.msk [vmem:[%s226_s30 + $0x8] sm:$0xff] %vm359_vm3, %v356_v46 }
 0x138   : > { %v349_v47 = vpop.f32.mrf.mxu1 }
 0x139   : > { %v350_v48 = vadd.f32 %v479_v40, %v349_v47 }
 0x13b   : > { %v357_v49 = vmax.f32 %v350_v48, 0.0 }
 0x13d   : > { %362 = vst.msk [vmem:[%s226_s30 + $0x10] sm:$0xff] %vm359_vm3, %v357_v49 }
 0x140   : > { %v352_v50 = vpop.f32.mrf.mxu1 }
 0x141   : > { %v353_v51 = vadd.f32 %v479_v40, %v352_v50 }
 0x143   : > { %v358_v52 = vmax.f32 %v353_v51, 0.0 }
 0x145   : > { %363 = vst.msk [vmem:[%s226_s30 + $0x18] sm:$0xff] %vm359_vm3, %v358_v52 }
 0x146 PF: > { %s15_s18 = sadd.s32 1, %s486_s18  }
 0x147   : > { %p12_p4 = scmp.ge.s32.totalorder %s15_s18, 4  }
 0x149   :  { %14 = sbr.rel (!%p12_p4) target bundleno = 1 (0x1), region = 70 }

</bundles_post_ra>
